<compile_context>
chip_gen: v7x
topology: tpu7x:2x2x1
jax: 0.10.0
libtpu: 0.0.40
codegen_flags: <defaults>
</compile_context>

<pallas_src>
import math

import jax
import jax.numpy as jnp
from jax.experimental import pallas as pl
from jax.experimental.pallas import tpu as pltpu


def _build_positional_encoding(in_channels: int, max_len: int = 20) -> jnp.ndarray:
    """Deterministically build the pe buffer, exactly as the PyTorch __init__."""
    position = jnp.arange(max_len, dtype=jnp.float32)[None, None, :]          # (1, 1, L)
    div_term = jnp.exp(
        jnp.arange(0, in_channels, 2, dtype=jnp.float32)
        * (-math.log(10000.0) / in_channels)
    )[None, :, None]                                                           # (1, C/2, 1)
    angles = position * div_term                                               # (1, C/2, L)
    pe = jnp.zeros((1, in_channels, max_len), dtype=jnp.float32)
    pe = pe.at[0, 0::2, :].set(jnp.sin(angles[0]))
    pe = pe.at[0, 1::2, :].set(jnp.cos(angles[0]))
    return pe


def _add_pe_kernel(x_ref, pe_ref, o_ref):
    # x_ref / o_ref: (bb, tile_r, 128) or (bb, C, tile_s)
    # pe_ref:        (1,  tile_r, 128) or (1,  C, tile_s)  -> broadcasts over batch block
    o_ref[...] = x_ref[...] + pe_ref[...]


_LANE = 128
_MAX_TILE_ROWS = 2048          # 2048*128*4 B = 1 MiB per pe buffer (lane-dense path)
_MAX_TILE_S = 2048             # multiple of 128 (fallback path S tile)
_TARGET_BLOCK_BYTES = 2 << 20  # ~2 MiB x-block -> grid-step overhead amortized,
                               # worst-case ~10 MiB live VMEM double-buffered
_TINY_BYTES = 64 * 1024        # below this, a pallas_call launch costs more than the add


def positional_encoding_forward(
    x: jnp.ndarray,
    pe: jnp.ndarray,
    *,
    donate_x: bool = False,
    force_pallas: bool = False,
) -> jnp.ndarray:
    """x: [B, C, S]; pe: [1, C, max_len] (max_len >= S) -> x + pe[..., :S]."""
    B, C, S = x.shape
    assert pe.ndim == 3 and pe.shape[0] == 1 and pe.shape[1] == C and pe.shape[2] >= S
    pe = pe.astype(x.dtype)                 # match x dtype (bf16-safe store path)
    itemsize = jnp.dtype(x.dtype).itemsize
    n = C * S
    total_bytes = B * n * itemsize

    # Truly tiny inputs: launch overhead dwarfs the data movement — let XLA fuse it.
    if total_bytes <= _TINY_BYTES and not force_pallas:
        return x + pe[..., :S]

    io_alias = {0: 0} if donate_x else {}

    if n % _LANE == 0:
        # ---- Lane-dense path: flatten (C, S) into rows of 128 lanes ----------------
        # NOTE: assumes default row-major [B, C, S] layout so the reshape is free.
        pe_s = pe if pe.shape[2] == S else pe[..., :S]   # no copy when max_len == S
        rows = n // _LANE
        xl = x.reshape(B, rows, _LANE)
        pel = pe_s.reshape(1, rows, _LANE)

        # Row tile: full extent (always a legal block) when small, else a 8-multiple.
        tile_r = rows if rows <= _MAX_TILE_ROWS else _MAX_TILE_ROWS
        # Batches per block from a ~2 MiB per-block byte budget.
        per_batch_bytes = tile_r * _LANE * itemsize
        bb = max(1, min(B, _TARGET_BLOCK_BYTES // per_batch_bytes))
        # Row-tile axis OUTER, batch axis INNER: pe's block index is constant across
        # consecutive inner steps, so the pipeline never re-fetches pe per batch block.
        grid = (pl.cdiv(rows, tile_r), pl.cdiv(B, bb))

        out = pl.pallas_call(
            _add_pe_kernel,
            out_shape=jax.ShapeDtypeStruct((B, rows, _LANE), x.dtype),
            grid_spec=pltpu.PrefetchScalarGridSpec(
                num_scalar_prefetch=0,
                grid=grid,
                in_specs=[
                    pl.BlockSpec((bb, tile_r, _LANE), lambda t, b: (b, t, 0)),
                    pl.BlockSpec((1, tile_r, _LANE), lambda t, b: (0, t, 0)),
                ],
                out_specs=pl.BlockSpec((bb, tile_r, _LANE), lambda t, b: (b, t, 0)),
            ),
            compiler_params=pltpu.CompilerParams(
                dimension_semantics=("parallel", "parallel"),
            ),
            input_output_aliases=io_alias,
        )(xl, pel)
        return out.reshape(B, C, S)

    # ---- Fallback: C*S not a multiple of 128 — [B, C, tile_s] blocks -------------
    # TODO(synk): for narrow unaligned S, padding S up to a 128 multiple in the
    #             wrapper would turn the lane-masked stores into full-lane stores.
    pe_s = pe if pe.shape[2] == S else pe[..., :S]
    tile_s = S if S <= _MAX_TILE_S else _MAX_TILE_S       # 128-multiple when tiled
    per_batch_bytes = C * tile_s * itemsize
    bb = max(1, min(B, _TARGET_BLOCK_BYTES // per_batch_bytes))
    grid = (pl.cdiv(S, tile_s), pl.cdiv(B, bb))           # S-tile outer, batch inner

    return pl.pallas_call(
        _add_pe_kernel,
        out_shape=jax.ShapeDtypeStruct((B, C, S), x.dtype),
        grid_spec=pltpu.PrefetchScalarGridSpec(
            num_scalar_prefetch=0,
            grid=grid,
            in_specs=[
                pl.BlockSpec((bb, C, tile_s), lambda si, b: (b, 0, si)),
                pl.BlockSpec((1, C, tile_s), lambda si, b: (0, 0, si)),
            ],
            out_specs=pl.BlockSpec((bb, C, tile_s), lambda si, b: (b, 0, si)),
        ),
        compiler_params=pltpu.CompilerParams(
            dimension_semantics=("parallel", "parallel"),
        ),
        input_output_aliases=io_alias,
    )(x, pe_s)


if __name__ == "__main__":
    key = jax.random.PRNGKey(0)

    # 1) Literal module shapes: batch=2, in_channels=8, seq_len=16, max_len=20.
    #    C*S = 128 -> lane-dense Pallas path (forced), plus the XLA tiny-bypass path.
    B, C, S = 2, 8, 16
    MAX_LEN = 20
    x = jax.random.normal(key, (B, C, S), dtype=jnp.float32)
    pe = _build_positional_encoding(C, MAX_LEN)
    ref = x + pe[..., :S]
    out = jax.block_until_ready(positional_encoding_forward(x, pe, force_pallas=True))
    assert out.shape == (B, C, S)
    assert jnp.allclose(out, ref, atol=1e-6, rtol=1e-6)
    out_xla = jax.block_until_ready(positional_encoding_forward(x, pe))  # tiny bypass
    assert jnp.allclose(out_xla, ref, atol=1e-6, rtol=1e-6)

    # 2) Non-128-aligned seq_len -> fallback [B, C, tile_s] path.
    S2 = 10
    x2 = jax.random.normal(jax.random.PRNGKey(1), (B, C, S2), dtype=jnp.float32)
    out2 = jax.block_until_ready(
        positional_encoding_forward(x2, pe, force_pallas=True)
    )
    assert jnp.allclose(out2, x2 + pe[..., :S2], atol=1e-6, rtol=1e-6)

    # 3) Longer EEG-like sequence -> lane-dense path with a multi-step (tile, batch)
    #    grid (bb from the 2 MiB budget, pe fetched once per row tile), and the
    #    in-place (donated) variant.
    B3, S3 = 4, 32768
    pe_long = _build_positional_encoding(C, S3)           # max_len == S -> no pe slice
    x3 = jax.random.normal(jax.random.PRNGKey(2), (B3, C, S3), dtype=jnp.float32)
    ref3 = x3 + pe_long[..., :S3]
    out3 = jax.block_until_ready(positional_encoding_forward(x3, pe_long))
    assert jnp.allclose(out3, ref3, atol=1e-6, rtol=1e-6)
    out3b = jax.block_until_ready(
        positional_encoding_forward(x3, pe_long, donate_x=True)
    )
    assert jnp.allclose(out3b, ref3, atol=1e-6, rtol=1e-6)

    print("KERNEL_OK")
</pallas_src>

<mosaic_0001>
module attributes {stable_mosaic.version = 11 : i64} {
  func.func @_add_pe_kernel(%arg0: i32, %arg1: i32, %arg2: memref<2x1x128xf32, #tpu.memory_space<vmem>>, %arg3: memref<1x1x128xf32, #tpu.memory_space<vmem>>, %arg4: memref<2x1x128xf32, #tpu.memory_space<vmem>>) attributes {dimension_semantics = [#tpu.dimension_semantics<parallel>, #tpu.dimension_semantics<parallel>], iteration_bounds = array<i64: 1, 1>, scalar_prefetch = 0 : i64, scratch_operands = 0 : i64, tpu.core_type = #tpu.core_type<tc>, window_params = [{transform_indices = @transform_0, window_bounds = array<i64: 2, 1, 128>}, {transform_indices = @transform_1, window_bounds = array<i64: 1, 1, 128>}, {transform_indices = @transform_2, window_bounds = array<i64: 2, 1, 128>}]} {
    %c0 = arith.constant 0 : index
    %c0_0 = arith.constant 0 : index
    %c0_1 = arith.constant 0 : index
    %0 = vector.load %arg2[%c0, %c0_0, %c0_1] : memref<2x1x128xf32, #tpu.memory_space<vmem>>, vector<2x1x128xf32>
    %c0_2 = arith.constant 0 : index
    %c0_3 = arith.constant 0 : index
    %c0_4 = arith.constant 0 : index
    %1 = vector.load %arg3[%c0_2, %c0_3, %c0_4] : memref<1x1x128xf32, #tpu.memory_space<vmem>>, vector<1x1x128xf32>
    %2 = vector.broadcast %1 : vector<1x1x128xf32> to vector<2x1x128xf32>
    %3 = arith.addf %0, %2 : vector<2x1x128xf32>
    %c0_5 = arith.constant 0 : index
    %c0_6 = arith.constant 0 : index
    %c0_7 = arith.constant 0 : index
    %4 = vector.load %arg4[%c0_5, %c0_6, %c0_7] : memref<2x1x128xf32, #tpu.memory_space<vmem>>, vector<2x1x128xf32>
    tpu.vector_store %arg4[%c0_5, %c0_6, %c0_7], %3 {strides = array<i32>} : memref<2x1x128xf32, #tpu.memory_space<vmem>>, vector<2x1x128xf32>,
    return
  }
  func.func @transform_0(%arg0: i32, %arg1: i32) -> (i32, i32, i32) {
    %c0_i32 = arith.constant 0 : i32
    %c0_i32_0 = arith.constant 0 : i32
    return %arg1, %arg0, %c0_i32 : i32, i32, i32
  }
  func.func @transform_1(%arg0: i32, %arg1: i32) -> (i32, i32, i32) {
    %c0_i32 = arith.constant 0 : i32
    %c0_i32_0 = arith.constant 0 : i32
    %c0_i32_1 = arith.constant 0 : i32
    return %c0_i32, %arg0, %c0_i32_0 : i32, i32, i32
  }
  func.func @transform_2(%arg0: i32, %arg1: i32) -> (i32, i32, i32) {
    %c0_i32 = arith.constant 0 : i32
    %c0_i32_0 = arith.constant 0 : i32
    return %arg1, %arg0, %c0_i32 : i32, i32, i32
  }
}

</mosaic_0001>

<bundles_post_ra>
// kernel: tpu_custom_call.1
= control target key start
LH: loop header
LB: loop body
LE: loop exit
PB: predicated region body
PF: predicated region fallthrough
CT: control target
= control target key end

     0   :  { %7 = vsyncpa [#allocation3], 0  ;;  %s154_s0 = inlined_call_operand.hbm [shape: f32[2,1,128], index: 0, kind: input, shape index: {}]   ;;  %s155_s1 = inlined_call_operand.vmem [shape: f32[1,1,128], index: 1, kind: input, shape index: {}]   ;;  %s156_s2 = inlined_call_operand.hbm [shape: f32[2,1,128], index: 2, kind: output, shape index: {}]  }
   0x1   :  { %8 = vsyncpa [#allocation4], 0  ;;  %s102_s9 = smov [#allocation2]   ;;  %s54_s13 = scalar_lea.hbm %s154_s0, 32 }
   0x2   :  { %s14_s10 = sshll.u32 %s102_s9, 4  ;;  %p55_p0 = scmp.ne.s32.totalorder %s154_s0, %s54_s13  ;;  %s15_s10 = int_to_ptr.vmem [resolvable:$true] %s14_s10 }
   0x3   :  { %p58_p1 = scmp.lt.u32.totalorder %s54_s13, %s154_s0 }
   0x5   :  { %p60_p2 = pnand %p58_p1, %p55_p0 }
   0x7   :  { %63 = shalt.err (!%p60_p2)
}
   0x8   :  { %s64_s18 = scalar_lea.vmem %s15_s10, 32  ;;  %p69_p4 = scmp.lt.s32.totalorder %s15_s10, %s15_s10 }
   0x9   :  { %p65_p3 = scmp.ne.s32.totalorder %s15_s10, %s64_s18  ;;  %p70_p5 = scmp.lt.s32.totalorder %s64_s18, %s64_s18 }
   0xb   :  { %p71_p6 = por %p70_p5, %p69_p4 }
   0xd   :  { %p72_p7 = pnand %p71_p6, %p65_p3 }
   0xf   :  { %75 = shalt.err (!%p72_p7)
}
  0x10   :  { %s103_s19 = smov 16   ;;  %s104_s20 = smov 1  }
  0x11   :  { %20 = dma.hbm_to_vmem [thread:$0]  %s154_s0, 32, %s15_s10, [#allocation3], %s103_s19, %s103_s19, %s104_s20  }
  0x12   :  { %98 = dma.done.wait [#allocation3], 32  }
  0x13   :  { %99 = vsyncadd [#allocation3], 4294967264  ;;  %s105_s23 = smov [#allocation5]   ;;  %v26_v0 = vld [vmem:[#allocation2] sm:$0x1] }
  0x14   :  { %s38_s24 = sshll.u32 %s105_s23, 4  ;;  %v28_v1 = vld [vmem:[%s155_s1] sm:$0x1]  ;;  %v27_v2 = vld [vmem:[#allocation2 + $0x1] sm:$0x1]  ;;  %s39_s24 = int_to_ptr.vmem [resolvable:$true] %s38_s24 }
  0x15   :  { %v29_v3 = vadd.f32 %v28_v1, %v26_v0  ;;  %v30_v4 = vadd.f32 %v28_v1, %v27_v2  ;;  %s76_s27 = scalar_lea.vmem %s39_s24, 32  ;;  %p81_p9 = scmp.lt.s32.totalorder %s39_s24, %s39_s24 }
  0x16   :  { %p77_p8 = scmp.ne.s32.totalorder %s39_s24, %s76_s27  ;;  %p82_p10 = scmp.lt.s32.totalorder %s76_s27, %s76_s27 }
  0x17   :  { %31 = vst [vmem:[#allocation5] sm:$0x1] %v29_v3  ;;  %32 = vst [vmem:[#allocation5 + $0x1] sm:$0x1] %v30_v4 }
  0x18   :  { %p83_p11 = por %p82_p10, %p81_p9 }
  0x1a   :  { %p84_p12 = pnand %p83_p11, %p77_p8 }
  0x1c   :  { %87 = shalt.err (!%p84_p12)
}
  0x1d   :  { %s88_s29 = scalar_lea.hbm %s156_s2, 32 }
  0x1e   :  { %p89_p13 = scmp.ne.s32.totalorder %s156_s2, %s88_s29  ;;  %p92_p0 = scmp.lt.u32.totalorder %s88_s29, %s156_s2 }
  0x20   :  { %p94_p1 = pnand %p92_p0, %p89_p13 }
  0x22   :  { %97 = shalt.err (!%p94_p1)
}
  0x23   :  { %44 = dma.vmem_to_hbm [thread:$0]  %s39_s24, 32, %s156_s2, [#allocation4], %s103_s19, %s103_s19, %s104_s20  }
  0x24   :  { %100 = dma.done.wait [#allocation4], 32  }
  0x25   :  { %101 = vsyncadd [#allocation4], 4294967264 }
  0x26   :  { %48 = vsyncpa [#allocation3], 1 }
  0x27   :  { %49 = vsyncpa [#allocation4], 1 }

</bundles_post_ra>
